<compile_context>
chip_gen: v6e
topology: v6e:2x2x1
jax: 0.10.0
libtpu: 0.0.40
codegen_flags: <defaults>
</compile_context>

<pallas_src>
import functools

import jax
import jax.numpy as jnp
from jax.experimental import pallas as pl
from jax.experimental.pallas import tpu as pltpu


def _vmem_limit_bytes():
    """Generation-aware scoped-VMEM limit with ~50% headroom on physical VMEM."""
    cap = 128 * 1024 * 1024
    try:
        cap = int(getattr(pltpu.get_tpu_info(), "vmem_capacity_bytes", cap))
    except Exception:
        pass
    if cap >= 96 * 1024 * 1024:               # v5e / v6e: 128 MiB physical
        return 64 * 1024 * 1024
    return min(int(cap * 0.7), 48 * 1024 * 1024)   # v7x: 64 MiB physical


def _choose_hw_tile(hw, c, itemsize, vmem_limit):
    """Largest 128-multiple lane tile whose streaming peak (~4x tile: 2 input +
    2 output double-buffers in the scale pass, plus the tiny gate/weights) fits
    under the scoped VMEM limit.  Capped at 8 MiB (diminishing returns)."""
    tile_budget = max(1 << 20, min((vmem_limit - (2 << 20)) // 4, 8 << 20))
    max_lanes = max(128, (tile_budget // max(1, c * itemsize)) // 128 * 128)
    if hw <= max_lanes:
        return hw            # whole spatial extent as one (always-legal) block
    return max_lanes         # 128-multiple tile; tail tile handled by masking


# ----------------------------- kernels --------------------------------------


def _fused_kernel(x_ref, w1_ref, w2_ref, o_ref, *, inv_hw):
    """Single pass: pool + excite + scale on a whole (C, HW) image in VMEM.
    w1_ref: (hidden, C) = fc1.weight, w2_ref: (C, hidden) = fc2.weight."""
    x = x_ref[...]                                                     # (C, HW)
    y = jnp.sum(x, axis=-1, keepdims=True, dtype=jnp.float32) * inv_hw  # (C, 1)
    h = jnp.maximum(
        jnp.dot(w1_ref[...], y, preferred_element_type=jnp.float32), 0.0)
    g = jax.nn.sigmoid(
        jnp.dot(w2_ref[...], h, preferred_element_type=jnp.float32))    # (C, 1)
    o_ref[...] = x * g.astype(o_ref.dtype)


def _pool_excite_kernel(x_ref, w1_ref, w2_ref, gate_ref, *,
                        hw_total, hw_tile, inv_hw):
    """Streaming pass 1: per-channel f32 sums over lane-dense HW tiles with the
    excitation fused at the last tile.  gate_ref (C,1) doubles as the resident
    sum accumulator across the (arbitrary) HW grid axis."""
    hw = pl.program_id(1)

    @pl.when(hw == 0)
    def _():
        gate_ref[...] = jnp.zeros_like(gate_ref)

    x = x_ref[...]
    if hw_total % hw_tile != 0:
        # Tail tile: out-of-bounds lanes contain garbage; zero them out.
        rem = hw_total - hw * hw_tile
        lane = jax.lax.broadcasted_iota(jnp.int32, x.shape, dimension=1)
        x = jnp.where(lane < rem, x, 0)
    gate_ref[...] += jnp.sum(x, axis=-1, keepdims=True, dtype=jnp.float32)

    @pl.when(hw == pl.num_programs(1) - 1)
    def _():
        y = gate_ref[...] * inv_hw                                     # (C, 1)
        h = jnp.maximum(
            jnp.dot(w1_ref[...], y, preferred_element_type=jnp.float32), 0.0)
        gate_ref[...] = jax.nn.sigmoid(
            jnp.dot(w2_ref[...], h, preferred_element_type=jnp.float32))


def _scale_kernel(x_ref, g_ref, o_ref):
    """x_ref/o_ref: (C, HW_tile); g_ref: (C, 1).  Lane-broadcast multiply."""
    o_ref[...] = x_ref[...] * g_ref[...].astype(o_ref.dtype)


# ----------------------------- wrapper --------------------------------------


def attention_mechanism(x, fc1_w, fc2_w, *, force_streaming=False, hw_tile=None):
    """SE block forward.  x: (B, C, H, W) NCHW.
    fc1_w: (hidden, C) and fc2_w: (C, hidden) are the raw, bias-free
    nn.Linear weights of the excitation MLP."""
    B, C, H, W = x.shape
    HW = H * W
    hidden = fc1_w.shape[0]
    inv_hw = 1.0 / HW
    vmem_limit = _vmem_limit_bytes()

    x_flat = x.reshape(B, C, HW)
    slab_bytes = C * HW * x.dtype.itemsize
    fused_ok = (4 * slab_bytes + (2 << 20)) <= vmem_limit

    if fused_ok and not force_streaming:
        # ---------- fused single pass: 2x HBM traffic ----------
        img_block = (pl.Squeezed(), C, HW)   # kernel sees (C, HW)
        out_flat = pl.pallas_call(
            functools.partial(_fused_kernel, inv_hw=inv_hw),
            out_shape=jax.ShapeDtypeStruct((B, C, HW), x.dtype),
            grid_spec=pltpu.PrefetchScalarGridSpec(
                num_scalar_prefetch=0,
                grid=(B,),
                in_specs=[pl.BlockSpec(img_block, lambda b: (b, 0, 0)),
                          pl.BlockSpec((hidden, C), lambda b: (0, 0)),
                          pl.BlockSpec((C, hidden), lambda b: (0, 0))],
                out_specs=pl.BlockSpec(img_block, lambda b: (b, 0, 0)),
            ),
            compiler_params=pltpu.CompilerParams(
                dimension_semantics=("parallel",),
                vmem_limit_bytes=vmem_limit),
        )(x_flat, fc1_w, fc2_w)
        return out_flat.reshape(B, C, H, W)

    # ---------- streaming fallback: 3x HBM traffic, bounded VMEM ----------
    hw_t = hw_tile if hw_tile is not None else _choose_hw_tile(
        HW, C, x.dtype.itemsize, vmem_limit)
    n_hw = pl.cdiv(HW, hw_t)
    grid = (B, n_hw)
    x_block = (pl.Squeezed(), C, hw_t)   # kernels see (C, hw_t)
    vec_block = (pl.Squeezed(), C, 1)    # kernels see (C, 1)

    # pass 1: pooling with excitation fused at the last HW tile.
    # TODO(synk): on v7x with B == 1, split HW into a 2-wide leading parallel
    # axis (two partial sums combined in the excitation) so both TensorCores
    # share this pass; today only the scale pass is fully parallel.
    # TODO(synk): optionally accumulate into a (C,128) VPU scratch and reduce
    # across lanes once at the last tile (v7x-only micro-opt).
    gates = pl.pallas_call(
        functools.partial(_pool_excite_kernel,
                          hw_total=HW, hw_tile=hw_t, inv_hw=inv_hw),
        out_shape=jax.ShapeDtypeStruct((B, C, 1), jnp.float32),
        grid_spec=pltpu.PrefetchScalarGridSpec(
            num_scalar_prefetch=0,
            grid=grid,
            in_specs=[pl.BlockSpec(x_block, lambda b, hw: (b, 0, hw)),
                      pl.BlockSpec((hidden, C), lambda b, hw: (0, 0)),
                      pl.BlockSpec((C, hidden), lambda b, hw: (0, 0))],
            out_specs=pl.BlockSpec(vec_block, lambda b, hw: (b, 0, 0)),
        ),
        compiler_params=pltpu.CompilerParams(
            dimension_semantics=("parallel", "arbitrary"),
            vmem_limit_bytes=vmem_limit),
    )(x_flat, fc1_w, fc2_w)

    # pass 2: scale, streamed over HW tiles (fully parallel).
    out_flat = pl.pallas_call(
        _scale_kernel,
        out_shape=jax.ShapeDtypeStruct((B, C, HW), x.dtype),
        grid_spec=pltpu.PrefetchScalarGridSpec(
            num_scalar_prefetch=0,
            grid=grid,
            in_specs=[pl.BlockSpec(x_block, lambda b, hw: (b, 0, hw)),
                      pl.BlockSpec(vec_block, lambda b, hw: (b, 0, 0))],
            out_specs=pl.BlockSpec(x_block, lambda b, hw: (b, 0, hw)),
        ),
        compiler_params=pltpu.CompilerParams(
            dimension_semantics=("parallel", "parallel"),
            vmem_limit_bytes=vmem_limit),
    )(x_flat, gates)

    return out_flat.reshape(B, C, H, W)


def _reference(x, fc1_w, fc2_w):
    """Plain-JAX reference mirroring the PyTorch forward."""
    y = jnp.mean(x.astype(jnp.float32), axis=(2, 3))          # (B, C)
    h = jnp.maximum(y @ fc1_w.T, 0.0)
    s = jax.nn.sigmoid(h @ fc2_w.T)
    return (x * s[:, :, None, None].astype(x.dtype)).astype(x.dtype)


if __name__ == "__main__":
    # Channels must be divisible by reduction=16, so C=32 -> hidden=2.
    B, C, H, W = 2, 32, 16, 16
    reduction = 16
    hidden = C // reduction

    key = jax.random.PRNGKey(0)
    kx, k1, k2 = jax.random.split(key, 3)

    x = jax.random.normal(kx, (B, C, H, W), dtype=jnp.float32)
    fc1_w = jax.random.normal(k1, (hidden, C), dtype=jnp.float32) * 0.1
    fc2_w = jax.random.normal(k2, (C, hidden), dtype=jnp.float32) * 0.1

    # 1) fused single-pass path (default: image fits VMEM).
    out = attention_mechanism(x, fc1_w, fc2_w)
    jax.block_until_ready(out)
    ref = _reference(x, fc1_w, fc2_w)
    assert out.shape == x.shape and out.dtype == x.dtype
    assert jnp.allclose(out, ref, atol=1e-5, rtol=1e-5)

    # 2) streaming fallback path (128-aligned HW, multiple tiles).
    out_s = attention_mechanism(x, fc1_w, fc2_w, force_streaming=True, hw_tile=128)
    jax.block_until_ready(out_s)
    assert jnp.allclose(out_s, ref, atol=1e-5, rtol=1e-5)

    # 3) streaming fallback with a non-128-aligned HW (masked tail tile).
    x2 = jax.random.normal(kx, (B, C, 13, 13), dtype=jnp.float32)
    out_t = attention_mechanism(x2, fc1_w, fc2_w, force_streaming=True, hw_tile=128)
    jax.block_until_ready(out_t)
    ref2 = _reference(x2, fc1_w, fc2_w)
    assert jnp.allclose(out_t, ref2, atol=1e-5, rtol=1e-5)

    print("KERNEL_OK")
</pallas_src>

<mosaic_0001>
module attributes {stable_mosaic.version = 11 : i64} {
  func.func @_fused_kernel(%arg0: i32, %arg1: memref<1x32x256xf32, #tpu.memory_space<vmem>>, %arg2: memref<2x32xf32, #tpu.memory_space<vmem>>, %arg3: memref<32x2xf32, #tpu.memory_space<vmem>>, %arg4: memref<1x32x256xf32, #tpu.memory_space<vmem>>) attributes {dimension_semantics = [#tpu.dimension_semantics<parallel>], iteration_bounds = array<i64: 2>, scalar_prefetch = 0 : i64, scratch_operands = 0 : i64, tpu.core_type = #tpu.core_type<tc>, window_params = [{transform_indices = @transform_0, window_bounds = array<i64: 1, 32, 256>}, {pipeline_mode = #tpu.pipeline_mode<synchronous>, transform_indices = @transform_1, window_bounds = array<i64: 2, 32>}, {pipeline_mode = #tpu.pipeline_mode<synchronous>, transform_indices = @transform_2, window_bounds = array<i64: 32, 2>}, {transform_indices = @transform_3, window_bounds = array<i64: 1, 32, 256>}]} {
    %c0 = arith.constant 0 : index
    %c0_0 = arith.constant 0 : index
    %c0_1 = arith.constant 0 : index
    %0 = vector.load %arg1[%c0, %c0_0, %c0_1] : memref<1x32x256xf32, #tpu.memory_space<vmem>>, vector<1x32x256xf32>
    %1 = vector.shape_cast %0 : vector<1x32x256xf32> to vector<32x256xf32>
    %cst = arith.constant dense<0.000000e+00> : vector<32xf32>
    %2 = vector.multi_reduction <add>, %1, %cst [1] : vector<32x256xf32> to vector<32xf32>
    %3 = vector.shape_cast %2 : vector<32xf32> to vector<32x1xf32>
    %cst_2 = arith.constant 3.906250e-03 : f32
    %4 = vector.broadcast %cst_2 : f32 to vector<32x1xf32>
    %5 = arith.mulf %3, %4 : vector<32x1xf32>
    %c0_3 = arith.constant 0 : index
    %c0_4 = arith.constant 0 : index
    %6 = vector.load %arg2[%c0_3, %c0_4] : memref<2x32xf32, #tpu.memory_space<vmem>>, vector<2x32xf32>
    %cst_5 = arith.constant dense<0.000000e+00> : vector<2x1xf32>
    %7 = tpu.matmul %6, %5, %cst_5 {dimension_numbers = #tpu.dot_dimension_numbers<[1], [0], [0], [1], [0, 0, 1, 1], [], []>} : vector<2x32xf32>, vector<32x1xf32>, vector<2x1xf32> -> vector<2x1xf32>
    %cst_6 = arith.constant 0.000000e+00 : f32
    %8 = vector.broadcast %cst_6 : f32 to vector<2x1xf32>
    %9 = arith.maximumf %7, %8 : vector<2x1xf32>
    %c0_7 = arith.constant 0 : index
    %c0_8 = arith.constant 0 : index
    %10 = vector.load %arg3[%c0_7, %c0_8] : memref<32x2xf32, #tpu.memory_space<vmem>>, vector<32x2xf32>
    %cst_9 = arith.constant dense<0.000000e+00> : vector<32x1xf32>
    %11 = tpu.matmul %10, %9, %cst_9 {dimension_numbers = #tpu.dot_dimension_numbers<[1], [0], [0], [1], [0, 0, 1, 1], [], []>} : vector<32x2xf32>, vector<2x1xf32>, vector<32x1xf32> -> vector<32x1xf32>
    %12 = arith.negf %11 : vector<32x1xf32>
    %13 = math.exp %12 : vector<32x1xf32>
    %cst_10 = arith.constant 1.000000e+00 : f32
    %14 = vector.broadcast %cst_10 : f32 to vector<32x1xf32>
    %15 = arith.addf %14, %13 : vector<32x1xf32>
    %16 = arith.divf %14, %15 : vector<32x1xf32>
    %17 = vector.broadcast %16 : vector<32x1xf32> to vector<32x256xf32>
    %18 = arith.mulf %1, %17 : vector<32x256xf32>
    %c0_11 = arith.constant 0 : index
    %c0_12 = arith.constant 0 : index
    %c0_13 = arith.constant 0 : index
    %19 = vector.load %arg4[%c0_11, %c0_12, %c0_13] : memref<1x32x256xf32, #tpu.memory_space<vmem>>, vector<1x32x256xf32>
    %20 = vector.shape_cast %19 : vector<1x32x256xf32> to vector<32x256xf32>
    %21 = vector.shape_cast %18 : vector<32x256xf32> to vector<1x32x256xf32>
    tpu.vector_store %arg4[%c0_11, %c0_12, %c0_13], %21 {strides = array<i32>} : memref<1x32x256xf32, #tpu.memory_space<vmem>>, vector<1x32x256xf32>,
    return
  }
  func.func @transform_0(%arg0: i32) -> (i32, i32, i32) {
    %c0_i32 = arith.constant 0 : i32
    %c0_i32_0 = arith.constant 0 : i32
    %c0_i32_1 = arith.constant 0 : i32
    return %arg0, %c0_i32, %c0_i32_0 : i32, i32, i32
  }
  func.func @transform_1(%arg0: i32) -> (i32, i32) {
    %c0_i32 = arith.constant 0 : i32
    %c0_i32_0 = arith.constant 0 : i32
    %c0_i32_1 = arith.constant 0 : i32
    return %c0_i32, %c0_i32_0 : i32, i32
  }
  func.func @transform_2(%arg0: i32) -> (i32, i32) {
    %c0_i32 = arith.constant 0 : i32
    %c0_i32_0 = arith.constant 0 : i32
    %c0_i32_1 = arith.constant 0 : i32
    return %c0_i32, %c0_i32_0 : i32, i32
  }
  func.func @transform_3(%arg0: i32) -> (i32, i32, i32) {
    %c0_i32 = arith.constant 0 : i32
    %c0_i32_0 = arith.constant 0 : i32
    %c0_i32_1 = arith.constant 0 : i32
    return %arg0, %c0_i32, %c0_i32_0 : i32, i32, i32
  }
}

</mosaic_0001>

<bundles_post_ra>
// kernel: tpu_custom_call.1
= control target key start
LH: loop header
LB: loop body
LE: loop exit
PB: predicated region body
PF: predicated region fallthrough
CT: control target
= control target key end

     0   :  { %8 = vsyncpa [#allocation3], 0  ;;  %s996_s0 = inlined_call_operand.hbm [shape: f32[2,32,256], index: 0, kind: input, shape index: {}]   ;;  %s997_s1 = inlined_call_operand.vmem [shape: f32[2,32], index: 1, kind: input, shape index: {}]   ;;  %s998_s2 = inlined_call_operand.vmem [shape: f32[32,2], index: 2, kind: input, shape index: {}]   ;;  %s999_s3 = inlined_call_operand.hbm [shape: f32[2,32,256], index: 3, kind: output, shape index: {}]  }
   0x1   :  { %10 = vsyncpa [#allocation3 + $0x1], 0 }
   0x2   :  { %11 = vsyncpa [#allocation4], 0 }
   0x3   :  { %13 = vsyncpa [#allocation4 + $0x1], 0  ;;  %s791_s12 = smov 0   ;;  %s793_s13 = smov 0  }
   0x4   :  { %s795_s14 = smov 0   ;;  %s797_s15 = smov 0  }
   0x5 LB: > { %s812_s16 = sadd.s32 4294967295, %s760_s15   ;;  %s542_s17 = sadd.s32 4294967294, %s760_s15   ;;  %s760_s15 = sphi %s797_s15, %s1014_s15   ;;  %s756_s14 = sphi %s795_s14, %s1013_s14   ;;  %s752_s13 = sphi %s793_s13, %s1012_s13   ;;  %s748_s12 = sphi %s791_s12, %s1011_s12  }
   0x6   : > { %s816_s18 = sadd.s32 1, %s760_s15   ;;  %s26_s19 = sadd.s32 1, %s756_s14 }
   0x7   : > { %s23_s20 = ssub.s32 %s760_s15, %s816_s18  ;;  %p33_p0 = scmp.ne.s32.totalorder %s756_s14, %s752_s13 }
   0x8   : > { %p24_p1 = scmp.eq.s32.totalorder %s23_s20, 0  ;;  %p34_p2 = scmp.eq.s32.totalorder %s760_s15, 0 }
   0x9   : > { %p39_p3 = scmp.ne.s32.totalorder %s752_s13, %s748_s12  ;;  %p40_p4 = scmp.eq.s32.totalorder %s812_s16, 0 }
   0xa   : > { %s828_s21 = scalar_select %p24_p1, %s756_s14, %s26_s19  }
   0xb   : > { %p830_p5 = por %p34_p2, %p33_p0  ;;  %p834_p6 = por %p40_p4, %p39_p3 }
   0xc   : > { %p105_p7 = scmp.eq.s32.totalorder %s812_s16, 1  ;;  %p111_p8 = scmp.eq.s32.totalorder %s542_s17, 1 }
   0xd   : > { %s1003_s23 = scalar_select %p834_p6, 1, 0 }
   0xe   : > { %p609_p10 = scmp.lt.s32.totalorder %s760_s15, 2  ;;  %p841_p11 = por %p105_p7, %p33_p0 }
   0xf   : > { %p845_p12 = por %p111_p8, %p39_p3  ;;  %s137_s26 = sand.u32 1, %s756_s14  }
  0x10   : > { %s1004_s24 = scalar_select %p841_p11, 1, 0 }
  0x11   : > { %s1005_s25 = scalar_select %p845_p12, 1, 0 }
  0x12   : > { %s566_s27 = sshll.u32 %s760_s15, 10  ;;  %s545_s28 = sshll.u32 %s137_s26, 6 }
  0x13   : > { %s854_s4 = scalar_lea.hbm %s996_s0, %s566_s27  ;;  %s141_s5 = scalar_lea.vmem [#allocation2], %s545_s28 }
  0x14   : > { %s148_s6 = sshll.u32 %s141_s5, 4  ;;  %p858_p13 = pnand %p609_p10, %p830_p5  ;;  %s862_s6 = int_to_ptr.vmem [resolvable:$true] %s148_s6 }
  0x15   : > { %s864_s8 = scalar_lea.sflag [#allocation3], %s137_s26  ;;  %s668_s9 = scalar_lea.hbm %s854_s4, 1024 }
  0x16   : > { %p669_p0 = scmp.ne.s32.totalorder %s854_s4, %s668_s9  ;;  %p670_p1 = pneg %p858_p13 }
  0x17   : > { %s673_s17 = scalar_lea.hbm %s996_s0, 2048  ;;  %p674_p4 = scmp.lt.s32.totalorder %s854_s4, %s996_s0 }
  0x18   : > { %p671_p2 = pnand %p670_p1, %p669_p0  ;;  %p675_p5 = scmp.lt.s32.totalorder %s673_s17, %s668_s9 }
  0x1a   : > { %p672_p3 = pneg %p671_p2  ;;  %p676_p7 = por %p675_p5, %p674_p4 }
  0x1c   : > { %p677_p8 = pnand %p676_p7, %p672_p3 }
  0x1e   : > { %680 = shalt.err (!%p677_p8)
}
  0x1f   : > { %s681_s22 = scalar_lea.vmem %s862_s6, 1024  ;;  %s762_s26 = smov [#allocation2]  }
  0x20   : > { %p682_p10 = scmp.ne.s32.totalorder %s862_s6, %s681_s22  ;;  %s686_s27 = sshll.u32 %s762_s26, 4  ;;  %s687_s27 = int_to_ptr.vmem [resolvable:$false] %s686_s27 }
  0x21   : > { %s688_s28 = scalar_lea.vmem %s687_s27, 2048  ;;  %p689_p2 = scmp.lt.s32.totalorder %s862_s6, %s687_s27 }
  0x22   : > { %p684_p9 = pnand %p682_p10, %p670_p1  ;;  %p690_p12 = scmp.lt.s32.totalorder %s688_s28, %s681_s22 }
  0x24   : > { %p685_p0 = pneg %p684_p9  ;;  %p691_p11 = por %p690_p12, %p689_p2 }
  0x26   : > { %p692_p6 = pnand %p691_p11, %p685_p0 }
  0x28   : > { %695 = shalt.err (!%p692_p6)
}
  0x29   : > { %s763_s29 = smov 256   ;;  %s764_s30 = smov 16  }
  0x2a   : > { %604 = dma.hbm_to_vmem [thread:$0]  (!%p858_p13), %s854_s4, 1024, %s862_s6, %s864_s8, %s763_s29, %s763_s29, %s764_s30  }
  0x2b   : > { %p548_p9 = scmp.ge.s32.totalorder %s760_s15, 1  ;;  %p156_p1 = scmp.lt.s32.totalorder %s760_s15, 3 }
  0x2d   : > { %p157_p3 = pnand %p548_p9, %p156_p1 }
  0x2e   : > { %s888_s5 = sand.u32 (!%p157_p3), 1, %s752_s13   ;;  %p1007_p6 = scmp.ne.s32.totalorder (!%p157_p3), %s1003_s23, 0 }
  0x2f   : > { %160 = sbr.rel (%p157_p3) target bundleno = 777 (0x309), region = 32  ;;  %s549_s9 = sshll.u32 (!%p157_p3), %s888_s5, 6 }
  0x30   : > { %s163_s10 = scalar_lea.sflag (!%p157_p3), [#allocation3], %s888_s5  ;;  %s166_s11 = scalar_lea.vmem (!%p157_p3), [#allocation2], %s549_s9 }
  0x34   : > { %739 = dma.done.wait (%p1007_p6), %s163_s10, 1024  }
  0x35   : > { %741 = vsyncadd (%p1007_p6), %s163_s10, 4294966272  ;;  %v898_v0 = vld [vmem:[%s166_s11 + $0x30] sm:$0xff]  ;;  %v900_v1 = vld [vmem:[%s166_s11 + $0x38] sm:$0xff]  ;;  %v765_v12 = vmov 0.0   ;;  %vm766_vm0 = vmmov 0   ;;  %vm214_vm1 = vcmask 261120  }
  0x36   : > { %v902_v2 = vld [vmem:[%s166_s11 + $0x20] sm:$0xff]  ;;  %v206_v3 = vadd.f32 %v900_v1, %v898_v0  ;;  %v906_v4 = vld [vmem:[%s166_s11 + $0x28] sm:$0xff]  ;;  %v908_v5 = vld [vmem:[%s166_s11 + $0x10] sm:$0xff]  ;;  %578 = vmatprep.subr.mxu0 %v765_v12  ;;  %586 = vmatprep.mubr.msk.f32.mxu0 %vm766_vm0, %v765_v12  ;;  %vm293_vm2 = vcmask 15360   ;;  %vm306_vm3 = vcmask 1041408   ;;  %v767_v29 = vmov 0  }
  0x37   : > { %v910_v6 = vld [vmem:[%s166_s11 + $0x18] sm:$0xff]  ;;  %v914_v8 = vld [vmem:[%s166_s11] sm:$0xff]  ;;  %v916_v9 = vld [vmem:[%s166_s11 + $0x8] sm:$0xff]  ;;  %v203_v10 = vadd.f32 %v906_v4, %v902_v2  ;;  %651 = vset.pattern.permute.xlu1 %v767_v29  ;;  %650 = vset.pattern.permute.xlu0 %v767_v29  ;;  %s188_s27 = scalar_lea.vmem [#allocation5], %s549_s9  ;;  %s567_s29 = sshll.u32 %s812_s16, 10 }
  0x38   : > { %v200_v7 = vadd.f32 %v910_v6, %v908_v5  ;;  %207 = vadd.xlane.f32.xlu0 %v206_v3  ;;  %v197_v11 = vadd.f32 %v916_v9, %v914_v8  ;;  %v213_v21 = vld [vmem:[%s997_s1] sm:$0x3]  ;;  %v290_v26 = vld [vmem:[%s998_s2 + $0x8] sm:$0xff]  ;;  %v291_v27 = vld [vmem:[%s998_s2 + $0x10] sm:$0xff]  ;;  %s469_s28 = sshll.u32 %s188_s27, 4  ;;  %s951_s10 = scalar_lea.hbm %s999_s3, %s567_s29  ;;  %s946_s28 = int_to_ptr.vmem [resolvable:$true] %s469_s28 }
  0x39   : > { %v289_v22 = vld [vmem:[%s998_s2] sm:$0xff]  ;;  %v292_v28 = vld [vmem:[%s998_s2 + $0x18] sm:$0xff]  ;;  %s456_s16 = scalar_lea.sflag [#allocation4], %s888_s5  ;;  %s696_s11 = scalar_lea.vmem %s946_s28, 1024 }
  0x3a   : > { %201 = vadd.xlane.f32.xlu1 %v200_v7  ;;  %591 = vmatprep.mubr.msk.f32.mxu1 %vm293_vm2, %v289_v22  ;;  %p697_p11 = scmp.ne.s32.totalorder %s946_s28, %s696_s11  ;;  %p1008_p12 = scmp.ne.s32.totalorder %s1004_s24, 0 }
  0x3b   : > { %s768_s23 = smov [#allocation5]  }
  0x3c   : > { %204 = vadd.xlane.f32.xlu0 %v203_v10  ;;  %p698_p13 = pnand %p697_p11, %p1008_p12  ;;  %s700_s4 = sshll.u32 %s768_s23, 4  ;;  %s701_s4 = int_to_ptr.vmem [resolvable:$false] %s700_s4 }
  0x3d   : > { %s702_s6 = scalar_lea.vmem %s701_s4, 2048  ;;  %p703_p5 = scmp.lt.s32.totalorder %s946_s28, %s701_s4 }
  0x3e   : > { %198 = vadd.xlane.f32.xlu1 %v197_v11  ;;  %p699_p4 = pneg %p698_p13  ;;  %p704_p7 = scmp.lt.s32.totalorder %s702_s6, %s696_s11 }
  0x40   : > { %p705_p8 = por %p704_p7, %p703_p5 }
  0x42   : > { %p706_p10 = pnand %p705_p8, %p699_p4 }
  0xc1   : > { %v208_v13 = vpop.xlane.xlu0 %207 }
  0xc2   : > { %v212_v14 = vmul.f32 0.00390625, %v208_v13 }
  0xc3   : > { %v202_v15 = vpop.xlane.xlu1 %201 }
  0xc4   : > { %579 = vmatpush3.msra.mxu0 %v212_v14  ;;  %v210_v19 = vmul.f32 0.00390625, %v202_v15 }
  0xc5   : > { %v205_v16 = vpop.xlane.xlu0 %204  ;;  %580 = vmatprep.subr.mxu0 %v765_v12 }
  0xc6   : > { %v211_v17 = vmul.f32 0.00390625, %v205_v16 }
  0xc7   : > { %v199_v18 = vpop.xlane.xlu1 %198 }
  0xc8   : > { %581 = vmatpush3.msra.mxu0 %v211_v17  ;;  %v209_v20 = vmul.f32 0.00390625, %v199_v18 }
  0xc9   : > { %582 = vmatprep.subr.mxu0 %v765_v12 }
  0xca   : > { %583 = vmatpush3.msra.mxu0 %v210_v19 }
  0xcb   : > { %584 = vmatprep.subr.mxu0 %v765_v12 }
  0xcc   : > { %585 = vmatpush3.msra.mxu0 %v209_v20 }
  0xcd   : > { %587 = vmatmul.mubr.msk.f32.vlgmr.msra.gmra.mxu0 %vm214_vm1, %v213_v21 }
 0x18d   : > { %v284_v23 = vpop.f32.mrf.mxu0 }
 0x18e   : > { %v288_v24 = vmax.f32 %v284_v23, 0.0 }
 0x18f   : > { %v588_v25 = vpop.f32.mrf.mxu0 }
 0x190   : > { %589 = vmatprep.subr.msk.mxu1 %vm306_vm3, %v288_v24 }
 0x191   : > { %590 = vmatpush3.msk.msra.mxu1 %vm306_vm3, %v288_v24 }
 0x192   : > { %592 = vmatmul.mubr.msk.f32.vlgmr.msra.gmra.mxu1 %vm293_vm2, %v290_v26 }
 0x193   : > { %594 = vmatprep.mubr.msk.f32.mxu1 %vm293_vm2, %v291_v27 }
 0x196   : > { %595 = vmatmul.mubr.msk.f32.gmra.mxu1 %vm293_vm2, %v292_v28 }
 0x252   : > { %v593_v30 = vpop.f32.mrf.mxu1 }
 0x253   : > { %v558_v31 = vmul.f32 -1.442695, %v593_v30 }
 0x254   : > { %v376_v32 = vpop.f32.mrf.mxu1 }
 0x255   : > { %652 = vpow2.f32 %v558_v31  ;;  %v557_v33 = vmul.f32 -1.442695, %v376_v32 }
 0x256   : > { %v596_v34 = vpop.f32.mrf.mxu1 }
 0x257   : > { %654 = vpow2.f32 %v557_v33  ;;  %v560_v35 = vmul.f32 -1.442695, %v596_v34 }
 0x258   : > { %v386_v36 = vpop.f32.mrf.mxu1 }
 0x259   : > { %v559_v37 = vmul.f32 -1.442695, %v386_v36  ;;  %656 = vpow2.f32 %v560_v35 }
 0x25b   : > { %658 = vpow2.f32 %v559_v37 }
 0x262   : > { %v653_v38 = vpop.eup %652 }
 0x263   : > { %v408_v39 = vadd.f32 1.0, %v653_v38 }
 0x264   : > { %v655_v40 = vpop.eup %654 }
 0x265   : > { %660 = vrcp.f32 %v408_v39  ;;  %v407_v41 = vadd.f32 1.0, %v655_v40 }
 0x266   : > { %v657_v42 = vpop.eup %656 }
 0x267   : > { %662 = vrcp.f32 %v407_v41  ;;  %v410_v45 = vadd.f32 1.0, %v657_v42 }
 0x268   : > { %v659_v43 = vpop.eup %658 }
 0x269   : > { %v409_v44 = vadd.f32 1.0, %v659_v43 }
 0x26b   : > { %664 = vrcp.f32 %v409_v44 }
 0x26c   : > { %666 = vrcp.f32 %v410_v45 }
 0x272   : > { %v661_v46 = vpop.eup %660 }
 0x273   : > { %426 = vperm.xlu1 %651, %v661_v46  }
 0x274   : > { %v663_v47 = vpop.eup %662 }
 0x275   : > { %421 = vperm.xlu0 %650, %v663_v47  }
 0x278   : > { %v665_v48 = vpop.eup %664 }
 0x279   : > { %431 = vperm.xlu1 %651, %v665_v48   ;;  %v667_v49 = vpop.eup %666 }
 0x27d   : > { %436 = vperm.xlu1 %651, %v667_v49  }
 0x2ee   : > { %v427_v50 = vpop.permute.xlu1 %426 }
 0x2ef   : > { %v441_v51 = vmul.f32 %v427_v50, %v908_v5  ;;  %v442_v52 = vmul.f32 %v427_v50, %v910_v6 }
 0x2f0   : > { %v422_v53 = vpop.permute.xlu0 %421 }
 0x2f1   : > { %449 = vst [vmem:[%s188_s27 + $0x10] sm:$0xff] %v441_v51  ;;  %450 = vst [vmem:[%s188_s27 + $0x18] sm:$0xff] %v442_v52  ;;  %v439_v54 = vmul.f32 %v422_v53, %v914_v8  ;;  %v440_v55 = vmul.f32 %v422_v53, %v916_v9 }
 0x2f3   : > { %447 = vst [vmem:[%s188_s27] sm:$0xff] %v439_v54  ;;  %448 = vst [vmem:[%s188_s27 + $0x8] sm:$0xff] %v440_v55 }
 0x2f4   : > { %v432_v56 = vpop.permute.xlu1 %431 }
 0x2f5   : > { %v443_v57 = vmul.f32 %v432_v56, %v902_v2  ;;  %v444_v58 = vmul.f32 %v432_v56, %v906_v4 }
 0x2f7   : > { %451 = vst [vmem:[%s188_s27 + $0x20] sm:$0xff] %v443_v57  ;;  %452 = vst [vmem:[%s188_s27 + $0x28] sm:$0xff] %v444_v58 }
 0x2f8   : > { %v437_v59 = vpop.permute.xlu1 %436 }
 0x2f9   : > { %v445_v60 = vmul.f32 %v437_v59, %v898_v0  ;;  %v446_v61 = vmul.f32 %v437_v59, %v900_v1 }
 0x2fb   : > { %453 = vst [vmem:[%s188_s27 + $0x30] sm:$0xff] %v445_v60  ;;  %454 = vst [vmem:[%s188_s27 + $0x38] sm:$0xff] %v446_v61 }
 0x2fc   : > { %709 = shalt.err (!%p706_p10)
}
 0x2fd   : > { %s710_s7 = scalar_lea.hbm %s951_s10, 1024  ;;  %s714_s19 = scalar_lea.hbm %s999_s3, 2048 }
 0x2fe   : > { %p711_p0 = scmp.ne.s32.totalorder %s951_s10, %s710_s7  ;;  %p715_p1 = scmp.lt.s32.totalorder %s951_s10, %s999_s3 }
 0x2ff   : > { %p716_p3 = scmp.lt.s32.totalorder %s714_s19, %s710_s7 }
 0x300   : > { %p712_p2 = pnand %p711_p0, %p1008_p12 }
 0x301   : > { %p717_p6 = por %p716_p3, %p715_p1 }
 0x302   : > { %p713_p9 = pneg %p712_p2 }
 0x304   : > { %p718_p11 = pnand %p717_p6, %p713_p9 }
 0x306   : > { %721 = shalt.err (!%p718_p11)
}
 0x307   : > { %s769_s26 = smov 256   ;;  %s770_s27 = smov 16  }
 0x308   : > { %599 = dma.vmem_to_hbm [thread:$0]  (%p1008_p12), %s946_s28, 1024, %s951_s10, %s456_s16, %s769_s26, %s769_s26, %s770_s27  }
 0x309 PF: > { %s484_s29 = sand.u32 1, %s748_s12   ;;  %p1009_p13 = scmp.ne.s32.totalorder %s1005_s25, 0 }
 0x30a   : > { %p1010_p4 = scmp.ge.s32.totalorder %s760_s15, 2  ;;  %s485_s30 = scalar_lea.sflag [#allocation4], %s484_s29 }
 0x30c   : > { %p606_p5 = pnand %p1010_p4, %p1009_p13 }
 0x30e   : > { %p607_p7 = pneg %p606_p5 }
 0x310   : > { %743 = dma.done.wait (%p607_p7), %s485_s30, 1024  }
 0x311   : > { %745 = vsyncadd (%p607_p7), %s485_s30, 4294966272  ;;  %p16_p8 = scmp.ge.s32.totalorder %s816_s18, 4   ;;  %s1011_s12 = smov %s752_s13 }
 0x312   : > { %s1012_s13 = smov %s756_s14  ;;  %s1013_s14 = smov %s828_s21 }
 0x313   : > { %s1014_s15 = smov %s816_s18  ;;  %18 = sbr.rel (!%p16_p8) target bundleno = 5 (0x5), region = 77 }
 0x318   :  { %490 = vsyncpa [#allocation3], 1 }
 0x319   :  { %492 = vsyncpa [#allocation3 + $0x1], 1 }
 0x31a   :  { %493 = vsyncpa [#allocation4], 1 }
 0x31b   :  { %495 = vsyncpa [#allocation4 + $0x1], 1 }

</bundles_post_ra>
